<compile_context>
chip_gen: v5e
topology: v5e:2x2
jax: 0.10.0
libtpu: 0.0.40
codegen_flags: <defaults>
</compile_context>

<pallas_src>
import jax
import jax.numpy as jnp
from jax import lax
from jax.experimental import pallas as pl
from jax.experimental.pallas import tpu as pltpu


# ----------------------------------------------------------------------------
# Fused kernel: DMA row-gather of embeddings -> attention pooling + masked max
# pooling -> Linear(2H,256) -> ReLU -> (Dropout=identity) -> Linear(256,2)
# -> per-example cross-entropy.  One grid step per batch tile.
# ----------------------------------------------------------------------------
def fused_kernel(ids_ref,            # SMEM [B_pad*L_pad] int32   (scalar prefetch)
                 mask_ref,           # VMEM [TB, L, 1]    f32
                 tbl_hbm,            # HBM  [V, H]        f32     (memory_space=ANY)
                 watt_ref,           # VMEM [H, H]        bf16
                 vatt_ref,           # VMEM [1, H]        f32
                 w1a_ref,            # VMEM [H, D1]       bf16    (w1 rows for att_pool)
                 w1b_ref,            # VMEM [H, D1]       bf16    (w1 rows for max_pool)
                 b1_ref,             # VMEM [1, D1]       f32
                 w2_ref,             # VMEM [D1, C]       f32
                 b2_ref,             # VMEM [1, C]        f32
                 y_ref,              # VMEM [TB, 1]       int32
                 logits_ref,         # out  [TB, C]       f32
                 nll_ref,            # out  [TB, 1]       f32
                 emb_buf,            # VMEM scratch [TB*L, H] f32
                 sem):               # DMA semaphore
    TB, L, _ = mask_ref.shape
    H = emb_buf.shape[-1]
    C = w2_ref.shape[-1]
    TL = TB * L
    base = pl.program_id(0) * TL

    # ---- embedding gather: DMA only the TL table rows this tile needs -------
    @pl.loop(0, TL)
    def _start(t):
        tok = ids_ref[base + t]
        pltpu.make_async_copy(tbl_hbm.at[pl.ds(tok, 1), :],
                              emb_buf.at[pl.ds(t, 1), :], sem).start()

    @pl.loop(0, TL)
    def _wait(t):
        # same-sized descriptor: consumes one row's completion per wait
        pltpu.make_async_copy(tbl_hbm.at[pl.ds(0, 1), :],
                              emb_buf.at[pl.ds(t, 1), :], sem).wait()

    emb = emb_buf[...]                                        # [TL, H] f32
    emb_bf = emb.astype(jnp.bfloat16)                         # MXU inputs bf16

    # ---- attention scores: tanh(emb @ W_att) . v_att -------------------------
    u = jnp.tanh(jnp.dot(emb_bf, watt_ref[...],
                         preferred_element_type=jnp.float32))  # [TL, H] f32
    # VPU multiply + lane reduce instead of a degenerate [H,1] MXU matmul.
    s = jnp.sum(u * vatt_ref[...], axis=-1, keepdims=True)     # [TL, 1]

    mask3 = mask_ref[...]                                      # [TB, L, 1]
    s3 = jnp.where(mask3 > 0.0, s.reshape(TB, L, 1), -1e30)

    # ---- masked softmax over the sequence (sublane) axis ---------------------
    m = jnp.max(s3, axis=1, keepdims=True)                     # [TB, 1, 1]
    p = jnp.exp(s3 - m)                                        # [TB, L, 1]
    denom = jnp.sum(p, axis=1, keepdims=True)                  # [TB, 1, 1]
    alpha = p * pl.reciprocal(denom, approx=True)              # EUP slot

    # ---- attention pooling + masked max pooling ------------------------------
    emb3 = emb.reshape(TB, L, H)
    att_pool = jnp.sum(alpha * emb3, axis=1)                   # [TB, H] f32
    max_pool = jnp.max(jnp.where(mask3 > 0.0, emb3, -1e30), axis=1)

    # ---- classifier (dropout = identity in eval) ------------------------------
    # concat([att, max]) @ w1 == att @ w1[:H] + max @ w1[H:]  -> no lane concat
    z = (jnp.dot(att_pool.astype(jnp.bfloat16), w1a_ref[...],
                 preferred_element_type=jnp.float32)
         + jnp.dot(max_pool.astype(jnp.bfloat16), w1b_ref[...],
                   preferred_element_type=jnp.float32)
         + b1_ref[...])
    z = jnp.maximum(z, 0.0)                                    # [TB, 256]
    logits = jnp.dot(z, w2_ref[...],
                     preferred_element_type=jnp.float32) + b2_ref[...]
    logits_ref[...] = logits                                   # [TB, C]

    # ---- per-example cross-entropy (batch mean is done in the wrapper) -------
    yoh = (y_ref[...] == lax.broadcasted_iota(jnp.int32, (TB, C), 1)
           ).astype(jnp.float32)
    mm = jnp.max(logits, axis=-1, keepdims=True)
    lse = mm + jnp.log(jnp.sum(jnp.exp(logits - mm), axis=-1, keepdims=True))
    nll_ref[...] = lse - jnp.sum(logits * yoh, axis=-1, keepdims=True)


def _padded_block_bytes(shape, dtype):
    """VMEM footprint of one block after (sublane, lane) tile padding."""
    itemsize = jnp.dtype(dtype).itemsize
    sub = 8 * (4 // itemsize)               # 8 rows f32/i32, 16 rows bf16
    lead = 1
    for d in shape[:-2]:
        lead *= d
    rows = -(-shape[-2] // sub) * sub
    cols = -(-shape[-1] // 128) * 128
    return lead * rows * cols * itemsize


def user_text2labels_pallas(params, user_text_x, user_text_att_mask, y, *,
                            tile_b=8):
    B, L = user_text_x.shape
    V, H = params["emb_table"].shape
    D1 = params["w1"].shape[1]
    C = params["w2"].shape[1]

    TB = max(8, -(-tile_b // 8) * 8)        # batch tile (sublane multiple)
    L_pad = -(-L // 8) * 8                  # keep [TL,H]->[TB,L,H] a pure relabel
    B_pad = -(-B // TB) * TB
    n_tiles = B_pad // TB

    # --- wrapper-side padding / layout / dtype prep ---------------------------
    ids = jnp.clip(user_text_x.astype(jnp.int32), 0, V - 1)   # guard OOB gather
    ids = jnp.pad(ids, ((0, B_pad - B), (0, L_pad - L)))
    mask = jnp.pad(user_text_att_mask.astype(jnp.float32),
                   ((0, B_pad - B), (0, L_pad - L)))
    if B_pad > B:                           # keep (discarded) dummy rows finite
        mask = mask.at[B:, 0].set(1.0)
    ids_flat = ids.reshape(B_pad * L_pad)
    mask3 = mask.reshape(B_pad, L_pad, 1)
    y_pad = jnp.pad(y.astype(jnp.int32), (0, B_pad - B)).reshape(B_pad, 1)

    tbl = params["emb_table"].astype(jnp.float32)      # f32 rows for aligned DMA
    watt = params["w_att"].astype(jnp.bfloat16)
    vatt = params["v_att"].reshape(1, H).astype(jnp.float32)
    w1a = params["w1"][:H].astype(jnp.bfloat16)
    w1b = params["w1"][H:].astype(jnp.bfloat16)
    b1 = params["b1"].reshape(1, D1).astype(jnp.float32)
    w2 = params["w2"].astype(jnp.float32)
    b2 = params["b2"].reshape(1, C).astype(jnp.float32)

    # --- explicit VMEM budget: double-buffered blocks + gather scratch --------
    block_bytes = (
        _padded_block_bytes((TB, L_pad, 1), jnp.float32)
        + _padded_block_bytes((H, H), jnp.bfloat16)
        + _padded_block_bytes((1, H), jnp.float32)
        + 2 * _padded_block_bytes((H, D1), jnp.bfloat16)
        + _padded_block_bytes((1, D1), jnp.float32)
        + _padded_block_bytes((D1, C), jnp.float32)
        + _padded_block_bytes((1, C), jnp.float32)
        + _padded_block_bytes((TB, 1), jnp.int32)
        + _padded_block_bytes((TB, C), jnp.float32)
        + _padded_block_bytes((TB, 1), jnp.float32))
    scratch_bytes = _padded_block_bytes((TB * L_pad, H), jnp.float32)
    vmem_limit = int(min(max(2 * block_bytes + scratch_bytes + (2 << 20),
                             16 << 20), 96 << 20))

    grid_spec = pltpu.PrefetchScalarGridSpec(
        num_scalar_prefetch=1,              # token ids -> SMEM
        grid=(n_tiles,),
        in_specs=[
            pl.BlockSpec((TB, L_pad, 1), lambda i, ids_sm: (i, 0, 0)),  # mask
            pl.BlockSpec(memory_space=pl.ANY),                          # emb table
            pl.BlockSpec((H, H), lambda i, ids_sm: (0, 0)),             # W_att
            pl.BlockSpec((1, H), lambda i, ids_sm: (0, 0)),             # v_att
            pl.BlockSpec((H, D1), lambda i, ids_sm: (0, 0)),            # w1[:H]
            pl.BlockSpec((H, D1), lambda i, ids_sm: (0, 0)),            # w1[H:]
            pl.BlockSpec((1, D1), lambda i, ids_sm: (0, 0)),            # b1
            pl.BlockSpec((D1, C), lambda i, ids_sm: (0, 0)),            # w2
            pl.BlockSpec((1, C), lambda i, ids_sm: (0, 0)),             # b2
            pl.BlockSpec((TB, 1), lambda i, ids_sm: (i, 0)),            # labels
        ],
        out_specs=(
            pl.BlockSpec((TB, C), lambda i, ids_sm: (i, 0)),            # logits
            pl.BlockSpec((TB, 1), lambda i, ids_sm: (i, 0)),            # nll
        ),
        scratch_shapes=[
            pltpu.VMEM((TB * L_pad, H), jnp.float32),   # gathered embeddings
            pltpu.SemaphoreType.DMA(()),                # gather DMA semaphore
        ],
    )

    logits_pad, nll_pad = pl.pallas_call(
        fused_kernel,
        out_shape=(jax.ShapeDtypeStruct((B_pad, C), jnp.float32),
                   jax.ShapeDtypeStruct((B_pad, 1), jnp.float32)),
        grid_spec=grid_spec,
        compiler_params=pltpu.CompilerParams(
            dimension_semantics=("parallel",),          # batch tiles independent
            vmem_limit_bytes=vmem_limit),
    )(ids_flat, mask3, tbl, watt, vatt, w1a, w1b, b1, w2, b2, y_pad)

    logits = logits_pad[:B]
    loss = jnp.mean(nll_pad[:B, 0])                     # CE mean finished here
    return logits, loss


# ----------------------------------------------------------------------------
# Full forward (signature parity with the PyTorch module)
# ----------------------------------------------------------------------------
def user_text2labels_forward(params, features_x, user_text_x, user_text_att_mask,
                             microblog_text_x, microblog_text_att_mask,
                             user_avatar_x, microblog_image_x, microblog_image_mask,
                             y, user_id):
    del (features_x, microblog_text_x, microblog_text_att_mask, user_avatar_x,
         microblog_image_x, microblog_image_mask, user_id)  # unused by the PyTorch forward
    return user_text2labels_pallas(params, user_text_x, user_text_att_mask, y)


# Pure-JAX reference (f32 math on the same bf16-rounded weights the kernel uses).
def reference_forward(params, user_text_x, user_text_att_mask, y):
    def bf(a):
        return a.astype(jnp.bfloat16).astype(jnp.float32)
    emb = params["emb_table"][user_text_x]
    mask = user_text_att_mask.astype(jnp.float32)
    u = jnp.tanh(emb @ bf(params["w_att"]))
    s = (u @ params["v_att"])[..., 0]
    s = jnp.where(mask > 0.0, s, -1e30)
    alpha = jax.nn.softmax(s, axis=-1)
    att = jnp.einsum("bl,blh->bh", alpha, emb)
    mx = jnp.max(jnp.where(mask[..., None] > 0.0, emb, -1e30), axis=1)
    h = jnp.concatenate([att, mx], axis=-1)
    z = jnp.maximum(h @ bf(params["w1"]) + params["b1"], 0.0)
    logits = z @ params["w2"] + params["b2"]
    lse = jax.scipy.special.logsumexp(logits, axis=-1)
    tgt = jnp.take_along_axis(logits, y[:, None], axis=-1)[:, 0]
    return logits, jnp.mean(lse - tgt)


if __name__ == "__main__":
    V, H, D1, C = 100, 32, 256, 2        # vocab, hidden_size, classifier dims

    key = jax.random.PRNGKey(0)
    ks = jax.random.split(key, 8)
    params = {
        "emb_table": jax.random.normal(ks[0], (V, H), jnp.float32) * 0.1,
        "w_att":     jax.random.normal(ks[1], (H, H), jnp.float32) * 0.1,
        "v_att":     jax.random.normal(ks[2], (H, 1), jnp.float32) * 0.1,
        "w1":        jax.random.normal(ks[3], (2 * H, D1), jnp.float32) * 0.05,
        "b1":        jnp.zeros((1, D1), jnp.float32),
        "w2":        jax.random.normal(ks[4], (D1, C), jnp.float32) * 0.05,
        "b2":        jnp.zeros((1, C), jnp.float32),
    }

    fwd = jax.jit(user_text2labels_forward)

    def run_case(B, L, seed):
        kx = jax.random.PRNGKey(seed)
        user_text_x = jax.random.randint(kx, (B, L), 0, V, dtype=jnp.int32)
        lengths = 1 + (jnp.arange(B) * 3) % L
        user_text_att_mask = (jnp.arange(L)[None, :] < lengths[:, None]
                              ).astype(jnp.int32)
        y = (jnp.arange(B) % 2).astype(jnp.int32)

        # unused-by-forward inputs (signature parity with the PyTorch module)
        features_x = jnp.zeros((B, 4), jnp.float32)
        microblog_text_x = jnp.zeros((B, L), jnp.int32)
        microblog_text_att_mask = jnp.ones((B, L), jnp.int32)
        user_avatar_x = jnp.zeros((B, 3, 16, 16), jnp.float32)
        microblog_image_x = jnp.zeros((B, 3, 16, 16), jnp.float32)
        microblog_image_mask = jnp.ones((B,), jnp.int32)
        user_id = jnp.arange(B, dtype=jnp.int32)

        logits, loss = fwd(params, features_x, user_text_x, user_text_att_mask,
                           microblog_text_x, microblog_text_att_mask,
                           user_avatar_x, microblog_image_x,
                           microblog_image_mask, y, user_id)
        jax.block_until_ready((logits, loss))

        ref_logits, ref_loss = reference_forward(params, user_text_x,
                                                 user_text_att_mask, y)
        assert logits.shape == (B, C)
        # tolerance covers bf16 matmul inputs + EUP approx-reciprocal softmax
        assert jnp.allclose(logits, ref_logits, atol=2e-2, rtol=2e-2), (
            f"logits mismatch (B={B}, L={L}): max |diff| = "
            f"{jnp.max(jnp.abs(logits - ref_logits))}")
        assert jnp.allclose(loss, ref_loss, atol=1e-2, rtol=1e-2), (
            f"loss mismatch (B={B}, L={L}): {loss} vs {ref_loss}")

    run_case(B=2, L=8, seed=1)    # single batch tile, no L padding
    run_case(B=10, L=12, seed=2)  # two batch tiles (parallel axis) + L padded to 16

    print("KERNEL_OK")
</pallas_src>

<mosaic_0001>
module attributes {stable_mosaic.version = 11 : i64} {
  func.func @fused_kernel(%arg0: i32, %arg1: memref<64xi32, #tpu.memory_space<smem>>, %arg2: memref<8x8x1xf32, #tpu.memory_space<vmem>>, %arg3: memref<100x32xf32, #tpu.memory_space<any>>, %arg4: memref<32x32xbf16, #tpu.memory_space<vmem>>, %arg5: memref<1x32xf32, #tpu.memory_space<vmem>>, %arg6: memref<32x256xbf16, #tpu.memory_space<vmem>>, %arg7: memref<32x256xbf16, #tpu.memory_space<vmem>>, %arg8: memref<1x256xf32, #tpu.memory_space<vmem>>, %arg9: memref<256x2xf32, #tpu.memory_space<vmem>>, %arg10: memref<1x2xf32, #tpu.memory_space<vmem>>, %arg11: memref<8x1xi32, #tpu.memory_space<vmem>>, %arg12: memref<8x2xf32, #tpu.memory_space<vmem>>, %arg13: memref<8x1xf32, #tpu.memory_space<vmem>>, %arg14: memref<64x32xf32, #tpu.memory_space<vmem>>, %arg15: memref<!tpu.dma_semaphore, #tpu.memory_space<semaphore_mem>>) attributes {dimension_semantics = [#tpu.dimension_semantics<parallel>], iteration_bounds = array<i64: 1>, scalar_prefetch = 1 : i64, scratch_operands = 2 : i64, tpu.core_type = #tpu.core_type<tc>, window_params = [{transform_indices = @transform_0, window_bounds = array<i64: 8, 8, 1>}, {}, {pipeline_mode = #tpu.pipeline_mode<synchronous>, transform_indices = @transform_2, window_bounds = array<i64: 32, 32>}, {pipeline_mode = #tpu.pipeline_mode<synchronous>, transform_indices = @transform_3, window_bounds = array<i64: 1, 32>}, {pipeline_mode = #tpu.pipeline_mode<synchronous>, transform_indices = @transform_4, window_bounds = array<i64: 32, 256>}, {pipeline_mode = #tpu.pipeline_mode<synchronous>, transform_indices = @transform_5, window_bounds = array<i64: 32, 256>}, {pipeline_mode = #tpu.pipeline_mode<synchronous>, transform_indices = @transform_6, window_bounds = array<i64: 1, 256>}, {pipeline_mode = #tpu.pipeline_mode<synchronous>, transform_indices = @transform_7, window_bounds = array<i64: 256, 2>}, {pipeline_mode = #tpu.pipeline_mode<synchronous>, transform_indices = @transform_8, window_bounds = array<i64: 1, 2>}, {transform_indices = @transform_9, window_bounds = array<i64: 8, 1>}, {transform_indices = @transform_10, window_bounds = array<i64: 8, 2>}, {transform_indices = @transform_11, window_bounds = array<i64: 8, 1>}]} {
    %c64_i32 = arith.constant 64 : i32
    %0 = arith.muli %arg0, %c64_i32 : i32
    %c0_i32 = arith.constant 0 : i32
    %c64_i32_0 = arith.constant 64 : i32
    %1 = arith.addi %c0_i32, %c64_i32_0 : i32
    %c1_i32 = arith.constant 1 : i32
    scf.for %arg16 = %c0_i32 to %1 step %c1_i32  : i32 {
      %c1_i32_46 = arith.constant 1 : i32
      %78 = arith.muli %arg16, %c1_i32_46 : i32
      %c0_i32_47 = arith.constant 0 : i32
      %79 = arith.addi %c0_i32_47, %78 : i32
      %80 = arith.addi %0, %79 : i32
      %81 = arith.index_cast %80 : i32 to index
      %82 = memref.load %arg1[%81] : memref<64xi32, #tpu.memory_space<smem>>
      %c0_i32_48 = arith.constant 0 : i32
      %83 = tpu.memref_slice %arg3[%82, %c0_i32_48] : memref<100x32xf32, #tpu.memory_space<any>> -> memref<1x32xf32, #tpu.memory_space<any>>
      %c0_i32_49 = arith.constant 0 : i32
      %84 = tpu.memref_slice %arg14[%79, %c0_i32_49] : memref<64x32xf32, #tpu.memory_space<vmem>> -> memref<1x32xf32, #tpu.memory_space<vmem>>
      tpu.enqueue_dma source(%83 : memref<1x32xf32, #tpu.memory_space<any>>) target(%84 : memref<1x32xf32, #tpu.memory_space<vmem>>) target_semaphore(%arg15 : memref<!tpu.dma_semaphore, #tpu.memory_space<semaphore_mem>>)
    }
    %c64_i32_1 = arith.constant 64 : i32
    %c0_i32_2 = arith.constant 0 : i32
    %c64_i32_3 = arith.constant 64 : i32
    %2 = arith.addi %c0_i32_2, %c64_i32_3 : i32
    %c1_i32_4 = arith.constant 1 : i32
    scf.for %arg16 = %c0_i32_2 to %2 step %c1_i32_4  : i32 {
      %c1_i32_46 = arith.constant 1 : i32
      %78 = arith.muli %arg16, %c1_i32_46 : i32
      %c0_i32_47 = arith.constant 0 : i32
      %79 = arith.addi %c0_i32_47, %78 : i32
      %c0_i32_48 = arith.constant 0 : i32
      %c0_i32_49 = arith.constant 0 : i32
      %80 = tpu.memref_slice %arg3[%c0_i32_48, %c0_i32_49] : memref<100x32xf32, #tpu.memory_space<any>> -> memref<1x32xf32, #tpu.memory_space<any>>
      %c0_i32_50 = arith.constant 0 : i32
      %81 = tpu.memref_slice %arg14[%79, %c0_i32_50] : memref<64x32xf32, #tpu.memory_space<vmem>> -> memref<1x32xf32, #tpu.memory_space<vmem>>
      tpu.wait_dma2 semaphore(%arg15 : memref<!tpu.dma_semaphore, #tpu.memory_space<semaphore_mem>>) src(%80 : memref<1x32xf32, #tpu.memory_space<any>>) dst(%81 : memref<1x32xf32, #tpu.memory_space<vmem>>)
    }
    %c64_i32_5 = arith.constant 64 : i32
    %c0 = arith.constant 0 : index
    %c0_6 = arith.constant 0 : index
    %3 = vector.load %arg14[%c0, %c0_6] : memref<64x32xf32, #tpu.memory_space<vmem>>, vector<64x32xf32>
    %4 = arith.truncf %3 : vector<64x32xf32> to vector<64x32xbf16>
    %c0_7 = arith.constant 0 : index
    %c0_8 = arith.constant 0 : index
    %5 = vector.load %arg4[%c0_7, %c0_8] : memref<32x32xbf16, #tpu.memory_space<vmem>>, vector<32x32xbf16>
    %cst = arith.constant dense<0.000000e+00> : vector<64x32xf32>
    %6 = tpu.matmul %4, %5, %cst {dimension_numbers = #tpu.dot_dimension_numbers<[1], [0], [0], [1], [0, 0, 1, 1], [], []>} : vector<64x32xbf16>, vector<32x32xbf16>, vector<64x32xf32> -> vector<64x32xf32>
    %7 = math.tanh %6 : vector<64x32xf32>
    %c0_9 = arith.constant 0 : index
    %c0_10 = arith.constant 0 : index
    %8 = vector.load %arg5[%c0_9, %c0_10] : memref<1x32xf32, #tpu.memory_space<vmem>>, vector<1x32xf32>
    %9 = vector.broadcast %8 : vector<1x32xf32> to vector<64x32xf32>
    %10 = arith.mulf %7, %9 : vector<64x32xf32>
    %cst_11 = arith.constant dense<0.000000e+00> : vector<64xf32>
    %11 = vector.multi_reduction <add>, %10, %cst_11 [1] : vector<64x32xf32> to vector<64xf32>
    %12 = vector.shape_cast %11 : vector<64xf32> to vector<64x1xf32>
    %c0_12 = arith.constant 0 : index
    %c0_13 = arith.constant 0 : index
    %c0_14 = arith.constant 0 : index
    %13 = vector.load %arg2[%c0_12, %c0_13, %c0_14] : memref<8x8x1xf32, #tpu.memory_space<vmem>>, vector<8x8x1xf32>
    %cst_15 = arith.constant 0.000000e+00 : f32
    %14 = vector.broadcast %cst_15 : f32 to vector<8x8x1xf32>
    %15 = arith.cmpf ogt, %13, %14 : vector<8x8x1xf32>
    %16 = vector.shape_cast %12 : vector<64x1xf32> to vector<8x8x1xf32>
    %cst_16 = arith.constant -1.000000e+30 : f32
    %17 = vector.broadcast %cst_16 : f32 to vector<8x8x1xf32>
    %18 = arith.select %15, %16, %17 : vector<8x8x1xi1>, vector<8x8x1xf32>
    %cst_17 = arith.constant dense<0xFF800000> : vector<8x1xf32>
    %19 = vector.multi_reduction <maximumf>, %18, %cst_17 [1] : vector<8x8x1xf32> to vector<8x1xf32>
    %20 = vector.shape_cast %19 : vector<8x1xf32> to vector<8x1x1xf32>
    %21 = vector.broadcast %20 : vector<8x1x1xf32> to vector<8x8x1xf32>
    %22 = arith.subf %18, %21 : vector<8x8x1xf32>
    %23 = math.exp %22 : vector<8x8x1xf32>
    %cst_18 = arith.constant dense<0.000000e+00> : vector<8x1xf32>
    %24 = vector.multi_reduction <add>, %23, %cst_18 [1] : vector<8x8x1xf32> to vector<8x1xf32>
    %25 = vector.shape_cast %24 : vector<8x1xf32> to vector<8x1x1xf32>
    %26 = tpu.reciprocal %25 {approx = true} : vector<8x1x1xf32> -> vector<8x1x1xf32>
    %27 = vector.broadcast %26 : vector<8x1x1xf32> to vector<8x8x1xf32>
    %28 = arith.mulf %23, %27 : vector<8x8x1xf32>
    %29 = vector.shape_cast %3 : vector<64x32xf32> to vector<8x8x32xf32>
    %30 = vector.broadcast %28 : vector<8x8x1xf32> to vector<8x8x32xf32>
    %31 = arith.mulf %30, %29 : vector<8x8x32xf32>
    %cst_19 = arith.constant dense<0.000000e+00> : vector<8x32xf32>
    %32 = vector.multi_reduction <add>, %31, %cst_19 [1] : vector<8x8x32xf32> to vector<8x32xf32>
    %cst_20 = arith.constant 0.000000e+00 : f32
    %33 = vector.broadcast %cst_20 : f32 to vector<8x8x1xf32>
    %34 = arith.cmpf ogt, %13, %33 : vector<8x8x1xf32>
    %cst_21 = arith.constant -1.000000e+30 : f32
    %35 = vector.shape_cast %34 : vector<8x8x1xi1> to vector<8x8x1xi1>
    %36 = vector.broadcast %35 : vector<8x8x1xi1> to vector<8x8x32xi1>
    %37 = vector.broadcast %cst_21 : f32 to vector<8x8x32xf32>
    %38 = arith.select %36, %29, %37 : vector<8x8x32xi1>, vector<8x8x32xf32>
    %cst_22 = arith.constant dense<0xFF800000> : vector<8x32xf32>
    %39 = vector.multi_reduction <maximumf>, %38, %cst_22 [1] : vector<8x8x32xf32> to vector<8x32xf32>
    %40 = arith.truncf %32 : vector<8x32xf32> to vector<8x32xbf16>
    %c0_23 = arith.constant 0 : index
    %c0_24 = arith.constant 0 : index
    %41 = vector.load %arg6[%c0_23, %c0_24] : memref<32x256xbf16, #tpu.memory_space<vmem>>, vector<32x256xbf16>
    %cst_25 = arith.constant dense<0.000000e+00> : vector<8x256xf32>
    %42 = tpu.matmul %40, %41, %cst_25 {dimension_numbers = #tpu.dot_dimension_numbers<[1], [0], [0], [1], [0, 0, 1, 1], [], []>} : vector<8x32xbf16>, vector<32x256xbf16>, vector<8x256xf32> -> vector<8x256xf32>
    %43 = arith.truncf %39 : vector<8x32xf32> to vector<8x32xbf16>
    %c0_26 = arith.constant 0 : index
    %c0_27 = arith.constant 0 : index
    %44 = vector.load %arg7[%c0_26, %c0_27] : memref<32x256xbf16, #tpu.memory_space<vmem>>, vector<32x256xbf16>
    %cst_28 = arith.constant dense<0.000000e+00> : vector<8x256xf32>
    %45 = tpu.matmul %43, %44, %cst_28 {dimension_numbers = #tpu.dot_dimension_numbers<[1], [0], [0], [1], [0, 0, 1, 1], [], []>} : vector<8x32xbf16>, vector<32x256xbf16>, vector<8x256xf32> -> vector<8x256xf32>
    %46 = arith.addf %42, %45 : vector<8x256xf32>
    %c0_29 = arith.constant 0 : index
    %c0_30 = arith.constant 0 : index
    %47 = vector.load %arg8[%c0_29, %c0_30] : memref<1x256xf32, #tpu.memory_space<vmem>>, vector<1x256xf32>
    %48 = vector.broadcast %47 : vector<1x256xf32> to vector<8x256xf32>
    %49 = arith.addf %46, %48 : vector<8x256xf32>
    %cst_31 = arith.constant 0.000000e+00 : f32
    %50 = vector.broadcast %cst_31 : f32 to vector<8x256xf32>
    %51 = arith.maximumf %49, %50 : vector<8x256xf32>
    %c0_32 = arith.constant 0 : index
    %c0_33 = arith.constant 0 : index
    %52 = vector.load %arg9[%c0_32, %c0_33] : memref<256x2xf32, #tpu.memory_space<vmem>>, vector<256x2xf32>
    %cst_34 = arith.constant dense<0.000000e+00> : vector<8x2xf32>
    %53 = tpu.matmul %51, %52, %cst_34 {dimension_numbers = #tpu.dot_dimension_numbers<[1], [0], [0], [1], [0, 0, 1, 1], [], []>} : vector<8x256xf32>, vector<256x2xf32>, vector<8x2xf32> -> vector<8x2xf32>
    %c0_35 = arith.constant 0 : index
    %c0_36 = arith.constant 0 : index
    %54 = vector.load %arg10[%c0_35, %c0_36] : memref<1x2xf32, #tpu.memory_space<vmem>>, vector<1x2xf32>
    %55 = vector.broadcast %54 : vector<1x2xf32> to vector<8x2xf32>
    %56 = arith.addf %53, %55 : vector<8x2xf32>
    %c0_37 = arith.constant 0 : index
    %c0_38 = arith.constant 0 : index
    %57 = vector.load %arg12[%c0_37, %c0_38] : memref<8x2xf32, #tpu.memory_space<vmem>>, vector<8x2xf32>
    tpu.vector_store %arg12[%c0_37, %c0_38], %56 {strides = array<i32>} : memref<8x2xf32, #tpu.memory_space<vmem>>, vector<8x2xf32>,
    %c0_39 = arith.constant 0 : index
    %c0_40 = arith.constant 0 : index
    %58 = vector.load %arg11[%c0_39, %c0_40] : memref<8x1xi32, #tpu.memory_space<vmem>>, vector<8x1xi32>
    %59 = tpu.iota {dimensions = array<i32: 1>} : vector<8x2xi32>
    %60 = vector.broadcast %58 : vector<8x1xi32> to vector<8x2xi32>
    %61 = arith.cmpi eq, %60, %59 : vector<8x2xi32>
    %62 = arith.extui %61 : vector<8x2xi1> to vector<8x2xi32>
    %63 = arith.sitofp %62 : vector<8x2xi32> to vector<8x2xf32>
    %cst_41 = arith.constant dense<0xFF800000> : vector<8xf32>
    %64 = vector.multi_reduction <maximumf>, %56, %cst_41 [1] : vector<8x2xf32> to vector<8xf32>
    %65 = vector.shape_cast %64 : vector<8xf32> to vector<8x1xf32>
    %66 = vector.broadcast %65 : vector<8x1xf32> to vector<8x2xf32>
    %67 = arith.subf %56, %66 : vector<8x2xf32>
    %68 = math.exp %67 : vector<8x2xf32>
    %cst_42 = arith.constant dense<0.000000e+00> : vector<8xf32>
    %69 = vector.multi_reduction <add>, %68, %cst_42 [1] : vector<8x2xf32> to vector<8xf32>
    %70 = vector.shape_cast %69 : vector<8xf32> to vector<8x1xf32>
    %71 = math.log %70 : vector<8x1xf32>
    %72 = arith.addf %65, %71 : vector<8x1xf32>
    %73 = arith.mulf %56, %63 : vector<8x2xf32>
    %cst_43 = arith.constant dense<0.000000e+00> : vector<8xf32>
    %74 = vector.multi_reduction <add>, %73, %cst_43 [1] : vector<8x2xf32> to vector<8xf32>
    %75 = vector.shape_cast %74 : vector<8xf32> to vector<8x1xf32>
    %76 = arith.subf %72, %75 : vector<8x1xf32>
    %c0_44 = arith.constant 0 : index
    %c0_45 = arith.constant 0 : index
    %77 = vector.load %arg13[%c0_44, %c0_45] : memref<8x1xf32, #tpu.memory_space<vmem>>, vector<8x1xf32>
    tpu.vector_store %arg13[%c0_44, %c0_45], %76 {strides = array<i32>} : memref<8x1xf32, #tpu.memory_space<vmem>>, vector<8x1xf32>,
    return
  }
  func.func @transform_0(%arg0: i32, %arg1: memref<64xi32, #tpu.memory_space<smem>>) -> (i32, i32, i32) {
    %c0_i32 = arith.constant 0 : i32
    %c0_i32_0 = arith.constant 0 : i32
    %c0_i32_1 = arith.constant 0 : i32
    return %arg0, %c0_i32, %c0_i32_0 : i32, i32, i32
  }
  func.func @transform_2(%arg0: i32, %arg1: memref<64xi32, #tpu.memory_space<smem>>) -> (i32, i32) {
    %c0_i32 = arith.constant 0 : i32
    %c0_i32_0 = arith.constant 0 : i32
    %c0_i32_1 = arith.constant 0 : i32
    return %c0_i32, %c0_i32_0 : i32, i32
  }
  func.func @transform_3(%arg0: i32, %arg1: memref<64xi32, #tpu.memory_space<smem>>) -> (i32, i32) {
    %c0_i32 = arith.constant 0 : i32
    %c0_i32_0 = arith.constant 0 : i32
    %c0_i32_1 = arith.constant 0 : i32
    return %c0_i32, %c0_i32_0 : i32, i32
  }
  func.func @transform_4(%arg0: i32, %arg1: memref<64xi32, #tpu.memory_space<smem>>) -> (i32, i32) {
    %c0_i32 = arith.constant 0 : i32
    %c0_i32_0 = arith.constant 0 : i32
    %c0_i32_1 = arith.constant 0 : i32
    return %c0_i32, %c0_i32_0 : i32, i32
  }
  func.func @transform_5(%arg0: i32, %arg1: memref<64xi32, #tpu.memory_space<smem>>) -> (i32, i32) {
    %c0_i32 = arith.constant 0 : i32
    %c0_i32_0 = arith.constant 0 : i32
    %c0_i32_1 = arith.constant 0 : i32
    return %c0_i32, %c0_i32_0 : i32, i32
  }
  func.func @transform_6(%arg0: i32, %arg1: memref<64xi32, #tpu.memory_space<smem>>) -> (i32, i32) {
    %c0_i32 = arith.constant 0 : i32
    %c0_i32_0 = arith.constant 0 : i32
    %c0_i32_1 = arith.constant 0 : i32
    return %c0_i32, %c0_i32_0 : i32, i32
  }
  func.func @transform_7(%arg0: i32, %arg1: memref<64xi32, #tpu.memory_space<smem>>) -> (i32, i32) {
    %c0_i32 = arith.constant 0 : i32
    %c0_i32_0 = arith.constant 0 : i32
    %c0_i32_1 = arith.constant 0 : i32
    return %c0_i32, %c0_i32_0 : i32, i32
  }
  func.func @transform_8(%arg0: i32, %arg1: memref<64xi32, #tpu.memory_space<smem>>) -> (i32, i32) {
    %c0_i32 = arith.constant 0 : i32
    %c0_i32_0 = arith.constant 0 : i32
    %c0_i32_1 = arith.constant 0 : i32
    return %c0_i32, %c0_i32_0 : i32, i32
  }
  func.func @transform_9(%arg0: i32, %arg1: memref<64xi32, #tpu.memory_space<smem>>) -> (i32, i32) {
    %c0_i32 = arith.constant 0 : i32
    %c0_i32_0 = arith.constant 0 : i32
    return %arg0, %c0_i32 : i32, i32
  }
  func.func @transform_10(%arg0: i32, %arg1: memref<64xi32, #tpu.memory_space<smem>>) -> (i32, i32) {
    %c0_i32 = arith.constant 0 : i32
    %c0_i32_0 = arith.constant 0 : i32
    return %arg0, %c0_i32 : i32, i32
  }
  func.func @transform_11(%arg0: i32, %arg1: memref<64xi32, #tpu.memory_space<smem>>) -> (i32, i32) {
    %c0_i32 = arith.constant 0 : i32
    %c0_i32_0 = arith.constant 0 : i32
    return %arg0, %c0_i32 : i32, i32
  }
}

</mosaic_0001>

<bundles_post_ra>
// kernel: user_text2labels_forward.1
= control target key start
LH: loop header
LB: loop body
LE: loop exit
PB: predicated region body
PF: predicated region fallthrough
CT: control target
= control target key end

     0   :  { %s1090_s24 = smov [#allocation5]   ;;  %s1502_s0 = inlined_call_operand.vmem [shape: s32[64], index: 0, kind: input, shape index: {}]   ;;  %s1503_s1 = inlined_call_operand.vmem [shape: f32[8,8,1], index: 1, kind: input, shape index: {}]   ;;  %s1504_s2 = inlined_call_operand.vmem [shape: f32[100,32], index: 2, kind: input, shape index: {}]   ;;  %s1505_s3 = inlined_call_operand.vmem [shape: bf16[32,32], index: 3, kind: input, shape index: {}]   ;;  %s1506_s4 = inlined_call_operand.vmem [shape: f32[1,32], index: 4, kind: input, shape index: {}]   ;;  %s1507_s5 = inlined_call_operand.vmem [shape: bf16[32,256], index: 5, kind: input, shape index: {}]   ;;  %s1508_s6 = inlined_call_operand.vmem [shape: bf16[32,256], index: 6, kind: input, shape index: {}]   ;;  %s1509_s7 = inlined_call_operand.vmem [shape: f32[1,256], index: 7, kind: input, shape index: {}]   ;;  %s1510_s8 = inlined_call_operand.vmem [shape: f32[256,2], index: 8, kind: input, shape index: {}]   ;;  %s1511_s9 = inlined_call_operand.vmem [shape: f32[1,2], index: 9, kind: input, shape index: {}]   ;;  %s1512_s10 = inlined_call_operand.vmem [shape: s32[8,1], index: 10, kind: input, shape index: {}]   ;;  %s1513_s11 = inlined_call_operand.vmem [shape: f32[8,2], index: 11, kind: output, shape index: {0}]   ;;  %s1514_s12 = inlined_call_operand.vmem [shape: f32[8,1], index: 12, kind: output, shape index: {1}]  }
   0x1   :  { %s19_s23 = sshll.u32 %s1502_s0, 4  ;;  %s20_s23 = int_to_ptr.vmem [resolvable:$true] %s19_s23 }
   0x2   :  { %22 = dma.vmem_to_smem %s20_s23, 16, %s1090_s24, [#allocation4] }
   0x3   :  { %1078 = dma.done.wait [#allocation4], 16 }
   0x4   :  { %1079 = vsyncadd [#allocation4], 4294967280 }
   0x5   :  { %25 = sfence }
   0x6   :  { %s1082_s25 = smov 0  }
   0x7 LB: > { %s53_s26 = sld [smem:[#allocation5 + %s1084_s25]]  ;;  %s55_s30 = scalar_lea.vmem [#allocation2], %s1084_s25  ;;  %s1084_s25 = sphi %s1082_s25, %s51_s25  }
   0xd   : > { %s54_s29 = scalar_lea.vmem %s1504_s2, %s53_s26 }
   0xe   : > { %v70_v0 = vld [vmem:[%s54_s29] sm:$0x1] }
   0xf   : > { %71 = vst [vmem:[%s55_s30] sm:$0x1] %v70_v0 }
  0x10   : > { %89 = vsyncadd [#allocation3], 16  ;;  %s51_s25 = sadd.s32 1, %s1084_s25  }
  0x11   : > { %p48_p0 = scmp.ge.s32.totalorder %s51_s25, 64  }
  0x12   :  { %s1086_s0 = smov (%p48_p0), 0  }
  0x13   :  { %50 = sbr.rel (!%p48_p0) target bundleno = 7 (0x7), region = 114 }
  0x18 LB: > { %1080 = dma.done.wait [#allocation3], 16  ;;  %s1088_s0 = sphi %s1086_s0, %s95_s0  }
  0x19   : > { %1081 = vsyncadd [#allocation3], 4294967280  ;;  %s95_s0 = sadd.s32 1, %s1088_s0  }
  0x1a   : > { %p92_p1 = scmp.ge.s32.totalorder %s95_s0, 64  }
  0x1b   :  { %v971_v1 = vld [vmem:[%s1505_s3 + $0x8] sm:$0xff] (%p92_p1)  ;;  %v970_v2 = vld [vmem:[%s1505_s3] sm:$0xff] (%p92_p1)  ;;  %v1174_v5 = vld [vmem:[#allocation2 + $0x30] sm:$0xff] (%p92_p1)  ;;  %vm127_vm0 = vcmask (%p92_p1), 261120   ;;  %v1091_v49 = vmov (%p92_p1), 0   ;;  %vm237_vm6 = vcmask (%p92_p1), 7168  }
  0x1c   :  { %94 = sbr.rel (!%p92_p1) target bundleno = 24 (0x18), region = 125  ;;  %v1170_v3 = vld [vmem:[#allocation2] sm:$0xff] (%p92_p1)  ;;  %146 = vmatpush.bf16.msra.mxu0 (%p92_p1), %v971_v1  ;;  %v1172_v4 = vld [vmem:[#allocation2 + $0x8] sm:$0xff] (%p92_p1)  ;;  %980 = vmatpush.bf16.msra.mxu1 (%p92_p1), %v971_v1  ;;  %v1176_v6 = vld [vmem:[#allocation2 + $0x38] sm:$0xff] (%p92_p1) }
  0x1d   :  { %v107_v7 = vpack.c.bf16 (%p92_p1), %v1172_v4, %v1170_v3  ;;  %v110_v8 = vpack.c.bf16 (%p92_p1), %v1176_v6, %v1174_v5  ;;  %v1184_v9 = vld [vmem:[#allocation2 + $0x10] sm:$0xff] (%p92_p1)  ;;  %v1186_v10 = vld [vmem:[#allocation2 + $0x18] sm:$0xff] (%p92_p1)  ;;  %v1191_v12 = vld [vmem:[#allocation2 + $0x20] sm:$0xff] (%p92_p1)  ;;  %1003 = vset.pattern.permute.xlu1 (%p92_p1), %v1091_v49  ;;  %1002 = vset.pattern.permute.xlu0 (%p92_p1), %v1091_v49 }
  0x1e   :  { %v108_v11 = vpack.c.bf16 (%p92_p1), %v1186_v10, %v1184_v9  ;;  %v1193_v13 = vld [vmem:[#allocation2 + $0x28] sm:$0xff] (%p92_p1)  ;;  %v1004_v16 = vld [vmem:[%s1506_s4] ss:$0 sm:$0xff] (%p92_p1)  ;;  %v215_v48 = vld [vmem:[%s1503_s1 + $0x10] sm:$0xff] (%p92_p1)  ;;  %1001 = vset.pattern.permute.xlu2 (%p92_p1), %v1091_v49 }
  0x1f   :  { %v109_v14 = vpack.c.bf16 (%p92_p1), %v1193_v13, %v1191_v12  ;;  %vm223_vm1 = vcmp.gt.f32.partialorder (%p92_p1), %v215_v48, 0.0  ;;  %v214_v51 = vld [vmem:[%s1503_s1 + $0x8] sm:$0xff] (%p92_p1)  ;;  %v213_v53 = vld [vmem:[%s1503_s1] sm:$0xff] (%p92_p1)  ;;  %v1231_v57 = vld [vmem:[%s1503_s1 + $0x38] sm:$0xff] (%p92_p1) }
  0x20   :  { %147 = vmatpush.bf16.msra.mxu0 (%p92_p1), %v970_v2  ;;  %981 = vmatpush.bf16.msra.mxu1 (%p92_p1), %v970_v2  ;;  %v496_v50 = vsel (%p92_p1), %vm223_vm1, 1, %v1091_v49  ;;  %v1219_v52 = vld [vmem:[%s1503_s1 + $0x28] sm:$0xff] (%p92_p1)  ;;  %vm222_vm3 = vcmp.gt.f32.partialorder (%p92_p1), %v214_v51, 0.0  ;;  %vm221_vm4 = vcmp.gt.f32.partialorder (%p92_p1), %v213_v53, 0.0  ;;  %v216_v58 = vld [vmem:[%s1503_s1 + $0x18] sm:$0xff] (%p92_p1)  ;;  %vm228_vm5 = vcmp.gt.f32.partialorder (%p92_p1), %v1231_v57, 0.0 }
  0x21   :  { %vm226_vm2 = vcmp.gt.f32.partialorder %v1219_v52, 0.0  ;;  %v495_v55 = vsel %vm222_vm3, 1, %v1091_v49  ;;  %v494_v56 = vsel %vm221_vm4, 1, %v1091_v49  ;;  %v501_v59 = vsel %vm228_vm5, 1, %v1091_v49  ;;  %v1244_v1 = vld [vmem:[%s1503_s1 + $0x20] sm:$0xff] }
  0x22   :  { %v499_v54 = vsel %vm226_vm2, 1, %v1091_v49  ;;  %vm224_vm7 = vcmp.gt.f32.partialorder %v216_v58, 0.0  ;;  %vm225_vm8 = vcmp.gt.f32.partialorder %v1244_v1, 0.0 }
  0x23   :  { %928 = vmatmul.msk.bf16.vlgmr.msra.gmra.mxu0 %vm127_vm0, %v107_v7  ;;  %931 = vmatmul.msk.bf16.vlgmr.msra.gmra.mxu1 %vm127_vm0, %v110_v8  ;;  %v497_v61 = vsel %vm224_vm7, 1, %v1091_v49 }
  0x33   :  { %929 = vmatmul.msk.bf16.gmra.mxu0 %vm127_vm0, %v108_v11  ;;  %v498_v11 = vsel %vm225_vm8, 1, %v1091_v49 }
  0x43   :  { %930 = vmatmul.msk.bf16.gmra.mxu0 %vm127_vm0, %v109_v14 }
  0xa0   :  { %v149_v15 = vpop.f32.mrf.mxu0  ;;  %v164_v20 = vpop.f32.mrf.mxu1 }
  0xa1   :  { %1006 = vtanh.f32 %v149_v15 }
  0xa7   :  { %v1007_v17 = vpop.eup %1006 }
  0xa8   :  { %v151_v18 = vpop.f32.mrf.mxu0  ;;  %v181_v19 = vmul.f32 %v1007_v17, %v1004_v16  ;;  %v166_v32 = vpop.f32.mrf.mxu1 }
  0xa9   :  { %1008 = vtanh.f32 %v151_v18 }
  0xaa   :  { %v189_v21 = vsel %vm127_vm0, %v181_v19, 0.0  ;;  %1010 = vtanh.f32 %v164_v20  ;;  %v219_v19 = vld [vmem:[%s1503_s1 + $0x30] sm:$0xff] }
  0xab   :  { %190 = vadd.xlane.f32.xlu0 %v189_v21  ;;  %vm227_vm9 = vcmp.gt.f32.partialorder %v219_v19, 0.0 }
  0xaf   :  { %v1009_v22 = vpop.eup %1008 }
  0xb0   :  { %v154_v23 = vpop.f32.mrf.mxu0  ;;  %v182_v24 = vmul.f32 %v1009_v22, %v1004_v16  ;;  %v1011_v25 = vpop.eup %1010 }
  0xb1   :  { %1012 = vtanh.f32 %v154_v23  ;;  %v187_v27 = vmul.f32 %v1011_v25, %v1004_v16 }
  0xb2   :  { %v192_v26 = vsel %vm127_vm0, %v182_v24, 0.0 }
  0xb3   :  { %193 = vadd.xlane.f32.xlu0 %v192_v26  ;;  %v207_v30 = vsel %vm127_vm0, %v187_v27, 0.0  ;;  %v500_v26 = vsel %vm227_vm9, 1, %v1091_v49 }
  0xb7   :  { %v1013_v28 = vpop.eup %1012 }
  0xb8   :  { %v156_v29 = vpop.f32.mrf.mxu0  ;;  %v183_v31 = vmul.f32 %v1013_v28, %v1004_v16 }
  0xb9   :  { %1014 = vtanh.f32 %v156_v29 }
  0xba   :  { %v195_v33 = vsel %vm127_vm0, %v183_v31, 0.0  ;;  %1016 = vtanh.f32 %v166_v32 }
  0xbb   :  { %208 = vadd.xlane.f32.xlu0 %v207_v30  ;;  %196 = vadd.xlane.f32.xlu1 %v195_v33 }
  0xbf   :  { %v1015_v34 = vpop.eup %1014 }
  0xc0   :  { %v159_v35 = vpop.f32.mrf.mxu0  ;;  %v184_v36 = vmul.f32 %v1015_v34, %v1004_v16  ;;  %v1017_v37 = vpop.eup %1016 }
  0xc1   :  { %1018 = vtanh.f32 %v159_v35  ;;  %v188_v39 = vmul.f32 %v1017_v37, %v1004_v16 }
  0xc2   :  { %v198_v38 = vsel %vm127_vm0, %v184_v36, 0.0 }
  0xc3   :  { %199 = vadd.xlane.f32.xlu1 %v198_v38  ;;  %v210_v42 = vsel %vm127_vm0, %v188_v39, 0.0 }
  0xc7   :  { %v1019_v40 = vpop.eup %1018 }
  0xc8   :  { %v161_v41 = vpop.f32.mrf.mxu0  ;;  %v185_v43 = vmul.f32 %v1019_v40, %v1004_v16 }
  0xc9   :  { %1020 = vtanh.f32 %v161_v41 }
  0xca   :  { %v201_v44 = vsel %vm127_vm0, %v185_v43, 0.0 }
  0xcb   :  { %211 = vadd.xlane.f32.xlu1 %v210_v42  ;;  %202 = vadd.xlane.f32.xlu2 %v201_v44 }
  0xcf   :  { %v1021_v45 = vpop.eup %1020  ;;  %506 = vperm.xlu0 %1002, %v495_v55  }
  0xd0   :  { %v186_v46 = vmul.f32 %v1021_v45, %v1004_v16 }
  0xd2   :  { %v204_v47 = vsel %vm127_vm0, %v186_v46, 0.0 }
  0xd3   :  { %205 = vadd.xlane.f32.xlu2 %v204_v47 }
  0xe4   :  { %509 = vperm.xlu1 %1003, %v496_v50  }
  0xeb   :  { %503 = vperm.xlu2 %1001, %v494_v56  }
  0xec   :  { %518 = vperm.xlu1 %1003, %v499_v54  }
  0xf3   :  { %512 = vperm.xlu2 %1001, %v497_v61  }
  0xf4   :  { %524 = vperm.xlu1 %1003, %v501_v59  }
  0xfb   :  { %515 = vperm.xlu2 %1001, %v498_v11  }
 0x103   :  { %521 = vperm.xlu2 %1001, %v500_v26  }
 0x11e   :  { %v191_v60 = vpop.xlane.xlu0 %190 }
 0x11f   :  { %v229_v62 = vsel %vm221_vm4, %v191_v60, -1e+30  ;;  %vm640_vm4 = vcmask 1042434  }
 0x120   :  { %v238_v63 = vsel %vm237_vm6, %v229_v62, -inf }
 0x121   :  { %v239_v0 = vrot.slane %v238_v63, 4 }
 0x123   :  { %v240_v2 = vmax.f32 %v238_v63, %v239_v0 }
 0x125   :  { %v241_v7 = vrot.slane %v240_v2, 2 }
 0x126   :  { %v194_v8 = vpop.xlane.xlu0 %193 }
 0x127   :  { %v242_v14 = vmax.f32 %v240_v2, %v241_v7  ;;  %v230_v15 = vsel %vm222_vm3, %v194_v8, -1e+30  ;;  %vm638_vm3 = vcmask 1041409  }
 0x128   :  { %v245_v16 = vsel %vm237_vm6, %v230_v15, -inf }
 0x129   :  { %v243_v17 = vrot.slane %v242_v14, 1  ;;  %v246_v18 = vrot.slane %v245_v16, 4 }
 0x12b   :  { %v244_v20 = vmax.f32 %v242_v14, %v243_v17  ;;  %v247_v21 = vmax.f32 %v245_v16, %v246_v18 }
 0x12d   :  { %v294_v22 = vsub.f32 %v229_v62, %v244_v20  ;;  %v248_v23 = vrot.slane %v247_v21, 2 }
 0x12e   :  { %v209_v24 = vpop.xlane.xlu0 %208  ;;  %v197_v25 = vpop.xlane.xlu1 %196 }
 0x12f   :  { %v302_v27 = vmul.f32 1.442695, %v294_v22  ;;  %v249_v28 = vmax.f32 %v247_v21, %v248_v23  ;;  %v235_v29 = vsel %vm227_vm9, %v209_v24, -1e+30  ;;  %v231_v30 = vsel %vm223_vm1, %v197_v25, -1e+30 }
 0x130   :  { %v280_v31 = vsel %vm237_vm6, %v235_v29, -inf  ;;  %v252_v32 = vsel %vm237_vm6, %v231_v30, -inf  ;;  %vm648_vm9 = vcmask 1046534  }
 0x131   :  { %1022 = vpow2.f32 %v302_v27  ;;  %v250_v33 = vrot.slane %v249_v28, 1  ;;  %v281_v34 = vrot.slane %v280_v31, 4  ;;  %v253_v35 = vrot.slane %v252_v32, 4 }
 0x133   :  { %v251_v36 = vmax.f32 %v249_v28, %v250_v33  ;;  %v282_v37 = vmax.f32 %v280_v31, %v281_v34  ;;  %v254_v38 = vmax.f32 %v252_v32, %v253_v35 }
 0x135   :  { %v295_v39 = vsub.f32 %v230_v15, %v251_v36  ;;  %v283_v40 = vrot.slane %v282_v37, 2  ;;  %v255_v41 = vrot.slane %v254_v38, 2 }
 0x136   :  { %v200_v42 = vpop.xlane.xlu1 %199 }
 0x137   :  { %v1257_v43 = vpop.eup %1022  ;;  %v304_v44 = vmul.f32 1.442695, %v295_v39  ;;  %v284_v45 = vmax.f32 %v282_v37, %v283_v40  ;;  %v256_v46 = vmax.f32 %v254_v38, %v255_v41  ;;  %v232_v47 = vsel %vm224_vm7, %v200_v42, -1e+30 }
 0x138   :  { %v318_v48 = vsel %vm237_vm6, %v1257_v43, 0.0  ;;  %v259_v49 = vsel %vm237_vm6, %v232_v47, -inf  ;;  %vm644_vm7 = vcmask 1044484  }
 0x139   :  { %v319_v50 = vrot.slane %v318_v48, 4  ;;  %1024 = vpow2.f32 %v304_v44  ;;  %v285_v51 = vrot.slane %v284_v45, 1  ;;  %v257_v53 = vrot.slane %v256_v46, 1 }
 0x13a   :  { %v260_v54 = vrot.slane %v259_v49, 4 }
 0x13b   :  { %v320_v55 = vadd.f32 %v319_v50, %v318_v48  ;;  %v286_v56 = vmax.f32 %v284_v45, %v285_v51  ;;  %v258_v59 = vmax.f32 %v256_v46, %v257_v53 }
 0x13c   :  { %v261_v60 = vmax.f32 %v259_v49, %v260_v54 }
 0x13d   :  { %v321_v61 = vrot.slane %v320_v55, 2  ;;  %v300_v62 = vsub.f32 %v235_v29, %v286_v56  ;;  %v296_v63 = vsub.f32 %v231_v30, %v258_v59 }
 0x13e   :  { %v262_v0 = vrot.slane %v261_v60, 2  ;;  %v212_v58 = vpop.xlane.xlu1 %211  ;;  %v203_v2 = vpop.xlane.xlu2 %202 }
 0x13f   :  { %v1263_v7 = vpop.eup %1024  ;;  %v322_v8 = vadd.f32 %v321_v61, %v320_v55  ;;  %v314_v11 = vmul.f32 1.442695, %v300_v62  ;;  %v306_v14 = vmul.f32 1.442695, %v296_v63  ;;  %v236_v15 = vsel %vm228_vm5, %v212_v58, -1e+30 }
 0x140   :  { %v325_v16 = vsel %vm237_vm6, %v1263_v7, 0.0  ;;  %v263_v17 = vmax.f32 %v261_v60, %v262_v0  ;;  %v287_v18 = vsel %vm237_vm6, %v236_v15, -inf  ;;  %v233_v19 = vsel %vm225_vm8, %v203_v2, -1e+30 }
 0x141   :  { %v326_v20 = vrot.slane %v325_v16, 4  ;;  %1026 = vpow2.f32 %v314_v11  ;;  %v288_v21 = vrot.slane %v287_v18, 4  ;;  %v266_v22 = vsel %vm237_vm6, %v233_v19, -inf }
 0x142   :  { %1028 = vpow2.f32 %v306_v14  ;;  %v264_v23 = vrot.slane %v263_v17, 1  ;;  %v267_v24 = vrot.slane %v266_v22, 4  ;;  %v323_v25 = vrot.slane %v322_v8, 1 }
 0x143   :  { %v327_v57 = vadd.f32 %v326_v20, %v325_v16  ;;  %v289_v26 = vmax.f32 %v287_v18, %v288_v21  ;;  %vm642_vm5 = vcmask 1043459   ;;  %vm646_vm8 = vcmask 1045509  }
 0x144   :  { %v265_v27 = vmax.f32 %v263_v17, %v264_v23  ;;  %v268_v28 = vmax.f32 %v266_v22, %v267_v24  ;;  %v324_v29 = vadd.f32 %v323_v25, %v322_v8 }
 0x145   :  { %v328_v30 = vrot.slane %v327_v57, 2  ;;  %v290_v31 = vrot.slane %v289_v26, 2 }
 0x146   :  { %v297_v32 = vsub.f32 %v232_v47, %v265_v27  ;;  %v269_v33 = vrot.slane %v268_v28, 2  ;;  %v206_v1 = vpop.xlane.xlu2 %205  ;;  %1030 = vrcp.f32 %v324_v29 }
 0x147   :  { %v1273_v34 = vpop.eup %1026  ;;  %v329_v35 = vadd.f32 %v328_v30, %v327_v57  ;;  %v291_v36 = vmax.f32 %v289_v26, %v290_v31  ;;  %v234_v37 = vsel %vm226_vm2, %v206_v1, -1e+30 }
 0x148   :  { %v1277_v38 = vpop.eup %1028  ;;  %v308_v39 = vmul.f32 1.442695, %v297_v32  ;;  %v270_v40 = vmax.f32 %v268_v28, %v269_v33  ;;  %v273_v41 = vsel %vm237_vm6, %v234_v37, -inf  ;;  %v360_v42 = vsel %vm237_vm6, %v1273_v34, 0.0 }
 0x149   :  { %v332_v44 = vsel %vm237_vm6, %v1277_v38, 0.0  ;;  %v292_v45 = vrot.slane %v291_v36, 1  ;;  %v274_v46 = vrot.slane %v273_v41, 4  ;;  %v330_v49 = vrot.slane %v329_v35, 1 }
 0x14a   :  { %v333_v47 = vrot.slane %v332_v44, 4  ;;  %1032 = vpow2.f32 %v308_v39  ;;  %v271_v48 = vrot.slane %v270_v40, 1  ;;  %v361_v53 = vrot.slane %v360_v42, 4 }
 0x14b   :  { %v293_v52 = vmax.f32 %v291_v36, %v292_v45  ;;  %v275_v50 = vmax.f32 %v273_v41, %v274_v46  ;;  %v331_v56 = vadd.f32 %v330_v49, %v329_v35 }
 0x14c   :  { %v1031_v51 = vpop.eup %1030  ;;  %v334_v54 = vadd.f32 %v333_v47, %v332_v44  ;;  %v272_v55 = vmax.f32 %v270_v40, %v271_v48  ;;  %v362_v8 = vadd.f32 %v361_v53, %v360_v42 }
 0x14d   :  { %v301_v59 = vsub.f32 %v236_v15, %v293_v52  ;;  %v276_v60 = vrot.slane %v275_v50, 2  ;;  %v382_v61 = vmul.f32 %v1031_v51, %v1257_v43  ;;  %1034 = vrcp.f32 %v331_v56 }
 0x14e   :  { %v335_v62 = vrot.slane %v334_v54, 2  ;;  %v298_v63 = vsub.f32 %v233_v19, %v272_v55  ;;  %v363_v43 = vrot.slane %v362_v8, 2 }
 0x14f   :  { %v316_v0 = vmul.f32 1.442695, %v301_v59  ;;  %v277_v58 = vmax.f32 %v275_v50, %v276_v60  ;;  %392 = vperm.xlu0 %1002, %v382_v61  }
 0x150   :  { %v1033_v2 = vpop.eup %1032  ;;  %v336_v11 = vadd.f32 %v335_v62, %v334_v54  ;;  %v310_v14 = vmul.f32 1.442695, %v298_v63  ;;  %v364_v28 = vadd.f32 %v363_v43, %v362_v8  ;;  %v504_v8 = vpop.permute.xlu2 %503 }
 0x151   :  { %v339_v16 = vsel %vm237_vm6, %v1033_v2, 0.0  ;;  %1036 = vpow2.f32 %v316_v0  ;;  %v278_v17 = vrot.slane %v277_v58, 1  ;;  %vm526_vm10 = vcmp.eq.s32.totalorder %v504_v8, 1 }
 0x152   :  { %v340_v18 = vrot.slane %v339_v16, 4  ;;  %1038 = vpow2.f32 %v310_v14  ;;  %v337_v15 = vrot.slane %v336_v11, 1  ;;  %v365_v39 = vrot.slane %v364_v28, 1 }
 0x153   :  { %v279_v20 = vmax.f32 %v277_v58, %v278_v17  ;;  %v1035_v21 = vpop.eup %1034 }
 0x154   :  { %v341_v22 = vadd.f32 %v340_v18, %v339_v16  ;;  %v338_v19 = vadd.f32 %v337_v15, %v336_v11  ;;  %v383_v24 = vmul.f32 %v1035_v21, %v1263_v7  ;;  %v366_v48 = vadd.f32 %v365_v39, %v364_v28 }
 0x155   :  { %v299_v23 = vsub.f32 %v234_v37, %v279_v20  ;;  %v534_v18 = vsel %vm526_vm10, %v1170_v3, -1e+30  ;;  %vm650_vm10 = vcmask 1047559  }
 0x156   :  { %v342_v25 = vrot.slane %v341_v22, 2  ;;  %1040 = vrcp.f32 %v338_v19  ;;  %397 = vperm.xlu2 %1001, %v383_v24   ;;  %v542_v15 = vsel %vm127_vm0, %v534_v18, -inf }
 0x157   :  { %v1037_v57 = vpop.eup %1036  ;;  %v312_v26 = vmul.f32 1.442695, %v299_v23  ;;  %v543_v43 = vrot.slane %v542_v15, 4 }
 0x158   :  { %v1039_v27 = vpop.eup %1038  ;;  %v343_v29 = vadd.f32 %v342_v25, %v341_v22  ;;  %v367_v30 = vsel %vm237_vm6, %v1037_v57, 0.0  ;;  %v510_v22 = vpop.permute.xlu1 %509 }
 0x159   :  { %v368_v31 = vrot.slane %v367_v30, 4  ;;  %v346_v32 = vsel %vm237_vm6, %v1039_v27, 0.0  ;;  %1042 = vpow2.f32 %v312_v26  ;;  %vm528_vm12 = vcmp.eq.s32.totalorder %v510_v22, 1 }
 0x15a   :  { %v347_v33 = vrot.slane %v346_v32, 4  ;;  %v344_v1 = vrot.slane %v343_v29, 1  ;;  %v536_v23 = vsel %vm528_vm12, %v1184_v9, -1e+30  ;;  %v544_v25 = vmax.f32 %v542_v15, %v543_v43 }
 0x15b   :  { %v369_v35 = vadd.f32 %v368_v31, %v367_v30  ;;  %v556_v24 = vsel %vm127_vm0, %v536_v23, -inf }
 0x15c   :  { %v1041_v36 = vpop.eup %1040  ;;  %v348_v37 = vadd.f32 %v347_v33, %v346_v32  ;;  %v345_v7 = vadd.f32 %v344_v1, %v343_v29  ;;  %v545_v31 = vrot.slane %v544_v25, 2 }
 0x15d   :  { %v370_v40 = vrot.slane %v369_v35, 2  ;;  %v384_v41 = vmul.f32 %v1041_v36, %v1277_v38 }
 0x15e   :  { %v349_v42 = vrot.slane %v348_v37, 2  ;;  %1044 = vrcp.f32 %v345_v7  ;;  %v507_v7 = vpop.permute.xlu0 %506  ;;  %v546_v39 = vmax.f32 %v544_v25, %v545_v31 }
 0x15f   :  { %v1043_v44 = vpop.eup %1042  ;;  %402 = vperm.xlu1 %1003, %v384_v41   ;;  %v371_v45 = vadd.f32 %v370_v40, %v369_v35  ;;  %1046 = vrcp.f32 %v366_v48  ;;  %vm527_vm15 = vcmp.eq.s32.totalorder %v507_v7, 1 }
 0x160   :  { %v350_v46 = vadd.f32 %v349_v42, %v348_v37  ;;  %v353_v47 = vsel %vm237_vm6, %v1043_v44, 0.0  ;;  %v519_v1 = vpop.permute.xlu1 %518 }
 0x161   :  { %v354_v49 = vrot.slane %v353_v47, 4  ;;  %v372_v54 = vrot.slane %v371_v45, 1  ;;  %vm531_vm14 = vcmp.eq.s32.totalorder %v519_v1, 1 }
 0x162   :  { %v351_v52 = vrot.slane %v350_v46, 1  ;;  %v539_v37 = vsel %vm531_vm14, %v1193_v13, -1e+30 }
 0x163   :  { %v355_v50 = vadd.f32 %v354_v49, %v353_v47  ;;  %v373_v59 = vadd.f32 %v372_v54, %v371_v45  ;;  %v577_v41 = vsel %vm127_vm0, %v539_v37, -inf  ;;  %v535_v47 = vsel %vm527_vm15, %v1172_v4, -1e+30 }
 0x164   :  { %v1045_v51 = vpop.eup %1044  ;;  %v352_v53 = vadd.f32 %v351_v52, %v350_v46  ;;  %v578_v45 = vrot.slane %v577_v41, 4  ;;  %v549_v52 = vsel %vm127_vm0, %v535_v47, -inf }
 0x165   :  { %v356_v55 = vrot.slane %v355_v50, 2  ;;  %v385_v56 = vmul.f32 %v1045_v51, %v1033_v2  ;;  %v1047_v61 = vpop.eup %1046  ;;  %v863_v2 = vld [vmem:[%s1512_s10] sm:$0xff]  ;;  %v547_v51 = vrot.slane %v546_v39, 1 }
 0x166   :  { %1048 = vrcp.f32 %v352_v53  ;;  %v388_v0 = vmul.f32 %v1047_v61, %v1273_v34  ;;  %v513_v34 = vpop.permute.xlu2 %512  ;;  %v579_v49 = vmax.f32 %v577_v41, %v578_v45  ;;  %v550_v53 = vrot.slane %v549_v52, 4  ;;  %v978_v41 = vld [vmem:[%s1508_s6 + $0x14] sm:$0xf] }
 0x167   :  { %v357_v38 = vadd.f32 %v356_v55, %v355_v50  ;;  %407 = vperm.xlu0 %1002, %v385_v56   ;;  %1050 = vrcp.f32 %v373_v59  ;;  %vm529_vm11 = vcmp.eq.s32.totalorder %v513_v34, 1  ;;  %v548_v8 = vmax.f32 %v546_v39, %v547_v51  ;;  %v942_v39 = vld [vmem:[%s1508_s6 + $0x10] sm:$0xf] }
 0x168   :  { %v537_v20 = vsel %vm529_vm11, %v1186_v10, -1e+30  ;;  %v580_v56 = vrot.slane %v579_v49, 2  ;;  %v525_v59 = vpop.permute.xlu1 %524  ;;  %v551_v61 = vmax.f32 %v549_v52, %v550_v53  ;;  %v934_v53 = vld [vmem:[%s1508_s6] sm:$0xf]  ;;  %vm861_vm11 = vcmask 15360  }
 0x169   :  { %v358_v60 = vrot.slane %v357_v38, 1  ;;  %v563_v21 = vsel %vm127_vm0, %v537_v20, -inf  ;;  %vm533_vm2 = vcmp.eq.s32.totalorder %v525_v59, 1  ;;  %v610_v22 = vpack.c.bf16 %v548_v8, %v548_v8 }
 0x16a   :  { %v564_v19 = vrot.slane %v563_v21, 4 }
 0x16b   :  { %v359_v62 = vadd.f32 %v358_v60, %v357_v38  ;;  %v630_v31 = vunpack.c.l.b16 %v610_v22 }
 0x16c   :  { %v1049_v63 = vpop.eup %1048 }
 0x16d   :  { %v386_v58 = vmul.f32 %v1049_v63, %v1039_v27  ;;  %1052 = vrcp.f32 %v359_v62  ;;  %v1051_v11 = vpop.eup %1050  ;;  %v565_v27 = vmax.f32 %v563_v21, %v564_v19  ;;  %v581_v63 = vmax.f32 %v579_v49, %v580_v56 }
 0x16e   :  { %v389_v17 = vmul.f32 %v1051_v11, %v1037_v57  ;;  %v557_v57 = vrot.slane %v556_v24, 4  ;;  %v516_v26 = vpop.permute.xlu2 %515  ;;  %v552_v11 = vrot.slane %v551_v61, 2 }
 0x16f   :  { %422 = vperm.xlu0 %1002, %v388_v0   ;;  %412 = vperm.xlu2 %1001, %v386_v58   ;;  %vm530_vm13 = vcmp.eq.s32.totalorder %v516_v26, 1  ;;  %v566_v35 = vrot.slane %v565_v27, 2  ;;  %v541_v58 = vsel %vm533_vm2, %v1176_v6, -1e+30 }
 0x170   :  { %v558_v28 = vmax.f32 %v556_v24, %v557_v57  ;;  %v538_v29 = vsel %vm530_vm13, %v1191_v12, -1e+30  ;;  %v553_v15 = vmax.f32 %v551_v61, %v552_v11 }
 0x171   :  { %v570_v30 = vsel %vm127_vm0, %v538_v29, -inf  ;;  %v567_v46 = vmax.f32 %v565_v27, %v566_v35 }
 0x172   :  { %v571_v32 = vrot.slane %v570_v30, 4  ;;  %v559_v33 = vrot.slane %v558_v28, 2  ;;  %v554_v23 = vrot.slane %v553_v15, 1 }
 0x173   :  { %v1053_v14 = vpop.eup %1052  ;;  %v568_v60 = vrot.slane %v567_v46, 1 }
 0x174   :  { %v387_v16 = vmul.f32 %v1053_v14, %v1043_v44  ;;  %v572_v36 = vmax.f32 %v570_v30, %v571_v32  ;;  %v560_v44 = vmax.f32 %v558_v28, %v559_v33  ;;  %v591_v14 = vsel %vm127_vm0, %v541_v58, -inf }
 0x175   :  { %v592_v18 = vrot.slane %v591_v14, 4  ;;  %v569_v34 = vmax.f32 %v567_v46, %v568_v60  ;;  %v555_v27 = vmax.f32 %v553_v15, %v554_v23  ;;  %v944_v46 = vld [vmem:[%s1508_s6 + $0x18] sm:$0xf0]  ;;  %v936_v60 = vld [vmem:[%s1508_s6 + $0x8] sm:$0xf0] }
 0x176   :  { %417 = vperm.xlu1 %1003, %v387_v16   ;;  %v573_v40 = vrot.slane %v572_v36, 2  ;;  %v522_v42 = vpop.permute.xlu2 %521  ;;  %v561_v55 = vrot.slane %v560_v44, 1  ;;  %v582_v16 = vrot.slane %v581_v63, 1  ;;  %v947_v49 = vor.u32 %v978_v41, %v944_v46 }
 0x177   :  { %867 = vperm.xlu0 %1002, %v863_v2   ;;  %427 = vperm.xlu2 %1001, %v389_v17   ;;  %vm532_vm1 = vcmp.eq.s32.totalorder %v522_v42, 1  ;;  %v593_v43 = vmax.f32 %v591_v14, %v592_v18  ;;  %v613_v26 = vpack.c.bf16 %v569_v34, %v569_v34  ;;  %v611_v33 = vpack.c.bf16 %v555_v27, %v555_v27  ;;  %v975_v27 = vld [vmem:[%s1507_s5 + $0x14] sm:$0xf0] }
 0x178   :  { %v574_v48 = vmax.f32 %v572_v36, %v573_v40  ;;  %v540_v50 = vsel %vm532_vm1, %v1174_v5, -1e+30  ;;  %v562_v2 = vmax.f32 %v560_v44, %v561_v55  ;;  %v583_v19 = vmax.f32 %v581_v63, %v582_v16  ;;  %v979_v40 = vld [vmem:[%s1508_s6 + $0x14] sm:$0xf0]  ;;  %695 = vmatpush.bf16.msra.mxu2 %v947_v49  ;;  %v976_v55 = vld [vmem:[%s1508_s6 + $0x4] sm:$0xf] }
 0x179   :  { %v584_v54 = vsel %vm127_vm0, %v540_v50, -inf  ;;  %v594_v57 = vrot.slane %v593_v43, 2  ;;  %v633_v37 = vunpack.c.l.b16 %v613_v26  ;;  %v631_v7 = vunpack.c.l.b16 %v611_v33 }
 0x17a   :  { %v585_v38 = vrot.slane %v584_v54, 4  ;;  %v575_v62 = vrot.slane %v574_v48, 1  ;;  %v612_v24 = vpack.c.bf16 %v562_v2, %v562_v2  ;;  %v615_v32 = vpack.c.bf16 %v583_v19, %v583_v19 }
 0x17b   :  { %v595_v30 = vmax.f32 %v593_v43, %v594_v57  ;;  %v943_v45 = vor.u32 %v979_v40, %v942_v39 }
 0x17c   :  { %v586_v0 = vmax.f32 %v584_v54, %v585_v38  ;;  %v576_v20 = vmax.f32 %v574_v48, %v575_v62  ;;  %v632_v1 = vunpack.c.l.b16 %v612_v24  ;;  %v635_v47 = vunpack.c.l.b16 %v615_v32  ;;  %v977_v54 = vld [vmem:[%s1508_s6 + $0x4] sm:$0xf0] }
 0x17d   :  { %v596_v36 = vrot.slane %v595_v30, 1  ;;  %v639_v48 = vsel %vm638_vm3, %v631_v7, %v630_v31  ;;  %682 = vmatpush.bf16.msrb.mxu1 %v943_v45  ;;  %v935_v59 = vor.u32 %v977_v54, %v934_v53  ;;  %v939_v62 = vor.u32 %v976_v55, %v936_v60  ;;  %v952_v31 = vld [vmem:[%s1507_s5] sm:$0xf]  ;;  %v973_v32 = vld [vmem:[%s1507_s5 + $0x4] sm:$0xf0] }
 0x17e   :  { %v587_v17 = vrot.slane %v586_v0, 2  ;;  %v614_v28 = vpack.c.bf16 %v576_v20, %v576_v20  ;;  %v641_v52 = vsel %vm640_vm4, %v632_v1, %v639_v48  ;;  %v954_v1 = vld [vmem:[%s1507_s5 + $0x8] sm:$0xf0] }
 0x17f   :  { %v597_v44 = vmax.f32 %v595_v30, %v596_v36  ;;  %v643_v56 = vsel %vm642_vm5, %v633_v37, %v641_v52  ;;  %696 = vmatpush.bf16.msra.mxu2 %v939_v62  ;;  %v953_v36 = vor.u32 %v973_v32, %v952_v31 }
 0x180   :  { %v588_v21 = vmax.f32 %v586_v0, %v587_v17  ;;  %v634_v42 = vunpack.c.l.b16 %v614_v28 }
 0x181   :  { %v617_v51 = vpack.c.bf16 %v597_v44, %v597_v44  ;;  %683 = vmatpush.bf16.msrb.mxu1 %v935_v59 }
 0x182   :  { %v589_v25 = vrot.slane %v588_v21, 1  ;;  %v645_v61 = vsel %vm644_vm7, %v634_v42, %v643_v56 }
 0x183   :  { %v637_v38 = vunpack.c.l.b16 %v617_v51  ;;  %v647_v63 = vsel %vm646_vm8, %v635_v47, %v645_v61 }
 0x184   :  { %v590_v29 = vmax.f32 %v588_v21, %v589_v25 }
 0x186   :  { %v616_v35 = vpack.c.bf16 %v590_v29, %v590_v29 }
 0x188   :  { %v636_v50 = vunpack.c.l.b16 %v616_v35 }
 0x18a   :  { %v649_v0 = vsel %vm648_vm9, %v636_v50, %v647_v63 }
 0x18b   :  { %v651_v58 = vsel %vm650_vm10, %v637_v38, %v649_v0 }
 0x18c   :  { %v652_v8 = vpack.c.b16 %v651_v58, %v651_v58 }
 0x18e   :  { %948 = vmatmul.msk.bf16.vlgmr.msrb.gmra.mxu1 %vm127_vm0, %v652_v8  ;;  %949 = vmatmul.msk.bf16.vlgmr.msra.gmra.mxu2 %vm127_vm0, %v652_v8 }
 0x1b0   :  { %v398_v11 = vpop.permute.xlu2 %397 }
 0x1b1   :  { %v431_v17 = vmul.f32 %v398_v11, %v1172_v4  ;;  %v962_v4 = vld [vmem:[%s1507_s5 + $0x18] sm:$0xf0] }
 0x1b3   :  { %v445_v20 = vsel %vm127_vm0, %v431_v17, 0.0 }
 0x1b4   :  { %v446_v23 = vrot.slane %v445_v20, 4 }
 0x1c1   :  { %v393_v14 = vpop.permute.xlu0 %392 }
 0x1c2   :  { %v430_v16 = vmul.f32 %v393_v14, %v1170_v3  ;;  %v974_v3 = vld [vmem:[%s1507_s5 + $0x14] sm:$0xf] }
 0x1c3   :  { %v965_v26 = vor.u32 %v974_v3, %v962_v4 }
 0x1c4   :  { %v438_v15 = vsel %vm127_vm0, %v430_v16, 0.0 }
 0x1c5   :  { %v439_v22 = vrot.slane %v438_v15, 4  ;;  %768 = vmatpush.bf16.msra.mxu1 %v965_v26 }
 0x1c7   :  { %v440_v28 = vadd.f32 %v439_v22, %v438_v15 }
 0x1c9   :  { %v413_v2 = vpop.permute.xlu2 %412  ;;  %v441_v41 = vrot.slane %v440_v28, 2 }
 0x1ca   :  { %v434_v43 = vmul.f32 %v413_v2, %v1191_v12 }
 0x1cb   :  { %v442_v52 = vadd.f32 %v441_v41, %v440_v28 }
 0x1cc   :  { %v466_v25 = vsel %vm127_vm0, %v434_v43, 0.0 }
 0x1cd   :  { %v467_v7 = vrot.slane %v466_v25, 4  ;;  %v443_v60 = vrot.slane %v442_v52, 1 }
 0x1cf   :  { %v468_v47 = vadd.f32 %v467_v7, %v466_v25 }
 0x1d1   :  { %v403_v18 = vpop.permute.xlu1 %402  ;;  %v428_v19 = vpop.permute.xlu2 %427  ;;  %v469_v38 = vrot.slane %v468_v47, 2 }
 0x1d2   :  { %v432_v34 = vmul.f32 %v403_v18, %v1184_v9  ;;  %v960_v9 = vld [vmem:[%s1507_s5 + $0x10] sm:$0xf]  ;;  %v437_v12 = vmul.f32 %v428_v19, %v1176_v6  ;;  %v972_v6 = vld [vmem:[%s1507_s5 + $0x4] sm:$0xf] }
 0x1d3   :  { %v961_v30 = vor.u32 %v975_v27, %v960_v9  ;;  %v957_v37 = vor.u32 %v972_v6, %v954_v1  ;;  %v470_v11 = vadd.f32 %v469_v38, %v468_v47  ;;  %v796_v38 = vld [vmem:[%s1510_s8 + $0x58] sm:$0xff] }
 0x1d4   :  { %v452_v21 = vsel %vm127_vm0, %v432_v34, 0.0  ;;  %v487_v39 = vsel %vm127_vm0, %v437_v12, 0.0 }
 0x1d5   :  { %v453_v24 = vrot.slane %v452_v21, 4  ;;  %755 = vmatpush.bf16.msra.mxu3 %v961_v30  ;;  %769 = vmatpush.bf16.msra.mxu1 %v957_v37  ;;  %v488_v46 = vrot.slane %v487_v39, 4  ;;  %v471_v43 = vrot.slane %v470_v11, 1 }
 0x1d7   :  { %v454_v33 = vadd.f32 %v453_v24, %v452_v21  ;;  %v489_v54 = vadd.f32 %v488_v46, %v487_v39  ;;  %v472_v12 = vadd.f32 %v471_v43, %v470_v11  ;;  %v807_v11 = vld [vmem:[%s1510_s8 + $0xb0] sm:$0xff]  ;;  %v789_v43 = vld [vmem:[%s1510_s8 + $0x20] sm:$0xff] }
 0x1d9   :  { %v408_v57 = vpop.permute.xlu0 %407  ;;  %v455_v42 = vrot.slane %v454_v33, 2  ;;  %756 = vmatpush.bf16.msra.mxu3 %v953_v36  ;;  %v490_v0 = vrot.slane %v489_v54, 2  ;;  %v602_v32 = vpack.c.bf16 %v472_v12, %v472_v12 }
 0x1da   :  { %v433_v29 = vmul.f32 %v408_v57, %v1186_v10  ;;  %v447_v10 = vadd.f32 %v446_v23, %v445_v20 }
 0x1db   :  { %v456_v51 = vadd.f32 %v455_v42, %v454_v33  ;;  %v491_v15 = vadd.f32 %v490_v0, %v489_v54  ;;  %v714_v7 = vunpack.c.l.b16 %v602_v32  ;;  %v813_v54 = vld [vmem:[%s1510_s8 + $0xe0] sm:$0xff] }
 0x1dc   :  { %v459_v35 = vsel %vm127_vm0, %v433_v29, 0.0  ;;  %v448_v45 = vrot.slane %v447_v10, 2  ;;  %v793_v0 = vld [vmem:[%s1510_s8 + $0x40] sm:$0xff] }
 0x1dd   :  { %v460_v40 = vrot.slane %v459_v35, 4  ;;  %v457_v61 = vrot.slane %v456_v51, 1  ;;  %v492_v4 = vrot.slane %v491_v15, 1 }
 0x1de   :  { %v449_v53 = vadd.f32 %v448_v45, %v447_v10 }
 0x1df   :  { %v461_v44 = vadd.f32 %v460_v40, %v459_v35  ;;  %v458_v16 = vadd.f32 %v457_v61, %v456_v51  ;;  %v493_v29 = vadd.f32 %v492_v4, %v491_v15  ;;  %v814_v51 = vld [vmem:[%s1510_s8 + $0xe8] sm:$0xff]  ;;  %v804_v15 = vld [vmem:[%s1510_s8 + $0x98] sm:$0xff]  ;;  %v785_v4 = vld [vmem:[%s1510_s8] sm:$0xff] }
 0x1e0   :  { %v450_v63 = vrot.slane %v449_v53, 1  ;;  %v810_v61 = vld [vmem:[%s1510_s8 + $0xc8] sm:$0xff] }
 0x1e1   :  { %v462_v48 = vrot.slane %v461_v44, 2  ;;  %v423_v49 = vpop.permute.xlu0 %422  ;;  %v600_v23 = vpack.c.bf16 %v458_v16, %v458_v16  ;;  %v605_v35 = vpack.c.bf16 %v493_v29, %v493_v29 }
 0x1e2   :  { %v436_v50 = vmul.f32 %v423_v49, %v1174_v5  ;;  %v444_v5 = vadd.f32 %v443_v60, %v442_v52  ;;  %v451_v34 = vadd.f32 %v450_v63, %v449_v53  ;;  %v815_v49 = vld [vmem:[%s1510_s8 + $0xf0] sm:$0xff]  ;;  %v800_v52 = vld [vmem:[%s1510_s8 + $0x78] sm:$0xff]  ;;  %v798_v53 = vld [vmem:[%s1510_s8 + $0x68] sm:$0xff] }
 0x1e3   :  { %v463_v55 = vadd.f32 %v462_v48, %v461_v44  ;;  %v712_v26 = vunpack.c.l.b16 %v600_v23  ;;  %v717_v42 = vunpack.c.l.b16 %v605_v35  ;;  %v816_v48 = vld [vmem:[%s1510_s8 + $0xf8] sm:$0xff]  ;;  %821 = vmatpush.msrb.mxu2 %v800_v52  ;;  %v795_v60 = vld [vmem:[%s1510_s8 + $0x50] sm:$0xff]  ;;  %v809_v63 = vld [vmem:[%s1510_s8 + $0xc0] sm:$0xff] }
 0x1e4   :  { %v480_v56 = vsel %vm127_vm0, %v436_v50, 0.0  ;;  %v598_v22 = vpack.c.bf16 %v444_v5, %v444_v5  ;;  %v599_v3 = vpack.c.bf16 %v451_v34, %v451_v34  ;;  %841 = vmatpush.msrb.mxu3 %v816_v48  ;;  %v799_v50 = vld [vmem:[%s1510_s8 + $0x70] sm:$0xff]  ;;  %v805_v5 = vld [vmem:[%s1510_s8 + $0xa0] sm:$0xff] }
 0x1e5   :  { %v481_v59 = vrot.slane %v480_v56, 4  ;;  %v464_v58 = vrot.slane %v463_v55, 1  ;;  %822 = vmatpush.msrb.mxu2 %v799_v50  ;;  %v791_v34 = vld [vmem:[%s1510_s8 + $0x30] sm:$0xff]  ;;  %v801_v23 = vld [vmem:[%s1510_s8 + $0x80] sm:$0xff] }
 0x1e6   :  { %v711_v28 = vunpack.c.l.b16 %v599_v3  ;;  %842 = vmatpush.msrb.mxu3 %v815_v49  ;;  %v786_v3 = vld [vmem:[%s1510_s8 + $0x8] sm:$0xff] }
 0x1e7   :  { %v482_v62 = vadd.f32 %v481_v59, %v480_v56  ;;  %v465_v20 = vadd.f32 %v464_v58, %v463_v55  ;;  %v797_v55 = vld [vmem:[%s1510_s8 + $0x60] sm:$0xff]  ;;  %v812_v56 = vld [vmem:[%s1510_s8 + $0xd8] sm:$0xff]  ;;  %823 = vmatpush.msrb.mxu2 %v798_v53  ;;  %v811_v59 = vld [vmem:[%s1510_s8 + $0xd0] sm:$0xff] }
 0x1e8   :  { %v418_v8 = vpop.permute.xlu1 %417  ;;  %843 = vmatpush.msrb.mxu3 %v814_v51  ;;  %v808_v58 = vld [vmem:[%s1510_s8 + $0xb8] sm:$0xff] }
 0x1e9   :  { %v483_v14 = vrot.slane %v482_v62, 2  ;;  %v435_v2 = vmul.f32 %v418_v8, %v1193_v13  ;;  %v601_v9 = vpack.c.bf16 %v465_v20, %v465_v20  ;;  %v710_v13 = vunpack.c.l.b16 %v598_v22  ;;  %824 = vmatpush.msrb.mxu2 %v797_v55  ;;  %v792_v8 = vld [vmem:[%s1510_s8 + $0x38] sm:$0xff]  ;;  %v790_v20 = vld [vmem:[%s1510_s8 + $0x28] sm:$0xff]  ;;  %v868_v35 = vpop.permute.xlu0 %867 }
 0x1ea   :  { %844 = vmatpush.msrb.mxu3 %v813_v54  ;;  %v802_v22 = vld [vmem:[%s1510_s8 + $0x88] sm:$0xff] }
 0x1eb   :  { %v484_v17 = vadd.f32 %v483_v14, %v482_v62  ;;  %v473_v18 = vsel %vm127_vm0, %v435_v2, 0.0  ;;  %v713_v30 = vunpack.c.l.b16 %v601_v9  ;;  %v718_v6 = vsel %vm638_vm3, %v711_v28, %v710_v13  ;;  %825 = vmatpush.msrb.mxu2 %v796_v38  ;;  %v794_v62 = vld [vmem:[%s1510_s8 + $0x48] sm:$0xff]  ;;  %v775_v9 = vld [vmem:[%s1509_s7] sm:$0x3] }
 0x1ec   :  { %v474_v21 = vrot.slane %v473_v18, 4  ;;  %v719_v1 = vsel %vm640_vm4, %v712_v26, %v718_v6  ;;  %845 = vmatpush.msrb.mxu3 %v812_v56  ;;  %v806_v2 = vld [vmem:[%s1510_s8 + $0xa8] sm:$0xff] }
 0x1ed   :  { %v485_v24 = vrot.slane %v484_v17, 1  ;;  %v720_v36 = vsel %vm642_vm5, %v713_v30, %v719_v1  ;;  %826 = vmatpush.msrb.mxu2 %v795_v60 }
 0x1ee   :  { %v475_v19 = vadd.f32 %v474_v21, %v473_v18  ;;  %v721_v41 = vsel %vm644_vm7, %v714_v7, %v720_v36  ;;  %846 = vmatpush.msrb.mxu3 %v811_v59  ;;  %v803_v21 = vld [vmem:[%s1510_s8 + $0x90] sm:$0xff] }
 0x1ef   :  { %v486_v27 = vadd.f32 %v485_v24, %v484_v17  ;;  %827 = vmatpush.msrb.mxu2 %v794_v62  ;;  %v787_v24 = vld [vmem:[%s1510_s8 + $0x10] sm:$0xff] }
 0x1f0   :  { %v476_v25 = vrot.slane %v475_v19, 2  ;;  %847 = vmatpush.msrb.mxu3 %v810_v61 }
 0x1f1   :  { %v604_v10 = vpack.c.bf16 %v486_v27, %v486_v27  ;;  %828 = vmatpush.msrb.mxu2 %v793_v0  ;;  %v777_v27 = vperm.slane %v775_v9, 0 }
 0x1f2   :  { %v477_v57 = vadd.f32 %v476_v25, %v475_v19  ;;  %848 = vmatpush.msrb.mxu3 %v809_v63  ;;  %v788_v19 = vld [vmem:[%s1510_s8 + $0x18] sm:$0xff]  ;;  %v778_v25 = vperm.slane %v775_v9, 1 }
 0x1f3   :  { %v716_v40 = vunpack.c.l.b16 %v604_v10  ;;  %829 = vmatpush.msrb.mxu2 %v792_v8  ;;  %v1005_v10 = vld [vmem:[%s1511_s9] ss:$0 sm:$0xff] }
 0x1f4   :  { %v478_v31 = vrot.slane %v477_v57, 1  ;;  %849 = vmatpush.msrb.mxu3 %v808_v58 }
 0x1f5   :  { %830 = vmatpush.msrb.mxu2 %v791_v34 }
 0x1f6   :  { %v479_v33 = vadd.f32 %v478_v31, %v477_v57  ;;  %850 = vmatpush.msrb.mxu3 %v807_v11 }
 0x1f7   :  { %831 = vmatpush.msrb.mxu2 %v790_v20 }
 0x1f8   :  { %v603_v37 = vpack.c.bf16 %v479_v33, %v479_v33  ;;  %851 = vmatpush.msrb.mxu3 %v806_v2  ;;  %v864_v33 = vlaneseq }
 0x1f9   :  { %832 = vmatpush.msrb.mxu2 %v789_v43 }
 0x1fa   :  { %v715_v39 = vunpack.c.l.b16 %v603_v37  ;;  %852 = vmatpush.msrb.mxu3 %v805_v5  ;;  %v865_v1 = vand.u32 127, %v864_v33 }
 0x1fb   :  { %833 = vmatpush.msrb.mxu2 %v788_v19 }
 0x1fc   :  { %v722_v44 = vsel %vm646_vm8, %v715_v39, %v721_v41  ;;  %853 = vmatpush.msrb.mxu3 %v804_v15 }
 0x1fd   :  { %v723_v45 = vsel %vm648_vm9, %v716_v40, %v722_v44  ;;  %834 = vmatpush.msrb.mxu2 %v787_v24  ;;  %v1092_v40 = vmov 0.0  }
 0x1fe   :  { %v724_v46 = vsel %vm650_vm10, %v717_v42, %v723_v45  ;;  %854 = vmatpush.msrb.mxu3 %v803_v21 }
 0x1ff   :  { %v725_v47 = vpack.c.b16 %v724_v46, %v724_v46  ;;  %835 = vmatpush.msrb.mxu2 %v786_v3 }
 0x200   :  { %855 = vmatpush.msrb.mxu3 %v802_v22 }
 0x201   :  { %966 = vmatmul.msk.bf16.vlgmr.msra.gmra.mxu3 %vm127_vm0, %v725_v47  ;;  %967 = vmatmul.msk.bf16.vlgmr.msra.gmra.mxu1 %vm127_vm0, %v725_v47  ;;  %vm869_vm0 = vcmp.eq.s32.totalorder %v868_v35, %v865_v1 }
 0x202   :  { %856 = vmatpush.msrb.mxu3 %v801_v23  ;;  %836 = vmatpush.msrb.mxu2 %v785_v4  ;;  %v968_v41 = vsel %vm869_vm0, 1.0, %v1092_v40 }
 0x20b   :  { %v685_v14 = vpop.f32.mrf.mxu1 }
 0x211   :  { %v698_v16 = vpop.f32.mrf.mxu2 }
 0x213   :  { %v687_v17 = vpop.f32.mrf.mxu1 }
 0x219   :  { %v700_v18 = vpop.f32.mrf.mxu2 }
 0x27e   :  { %v771_v12 = vpop.f32.mrf.mxu1 }
 0x27f   :  { %v772_v13 = vadd.f32 %v771_v12, %v698_v16 }
 0x281   :  { %v782_v57 = vadd.f32 %v778_v25, %v772_v13 }
 0x283   :  { %v784_v26 = vmax.f32 %v782_v57, 0.0 }
 0x284   :  { %v758_v28 = vpop.f32.mrf.mxu3 }
 0x285   :  { %v759_v29 = vadd.f32 %v758_v28, %v685_v14  ;;  %857 = vmatmul.f32.vlgmr.msrb.gmra.mxu3 %v784_v26 }
 0x286   :  { %v773_v30 = vpop.f32.mrf.mxu1 }
 0x287   :  { %v781_v31 = vadd.f32 %v777_v27, %v759_v29 }
 0x289   :  { %v783_v32 = vmax.f32 %v781_v31, 0.0 }
 0x28b   :  { %837 = vmatmul.f32.vlgmr.msrb.gmra.mxu2 %v783_v32 }
 0x28c   :  { %v760_v6 = vpop.f32.mrf.mxu3 }
 0x308   :  { %v858_v7 = vpop.f32.mrf.mxu3 }
 0x30e   :  { %v838_v36 = vpop.f32.mrf.mxu2 }
 0x30f   :  { %v839_v37 = vadd.f32 %v1005_v10, %v838_v36 }
 0x311   :  { %v859_v39 = vadd.f32 %v858_v7, %v839_v37 }
 0x313   :  { %v872_v42 = vsel %vm861_vm11, %v859_v39, -inf  ;;  %862 = vst.msk [vmem:[%s1513_s11] sm:$0xff] %vm861_vm11, %v859_v39  ;;  %v884_v44 = vmul.f32 %v968_v41, %v859_v39 }
 0x314   :  { %873 = vmax.xlane.f32.xlu1 %v872_v42 }
 0x315   :  { %v885_v45 = vsel %vm861_vm11, %v884_v44, 0.0 }
 0x316   :  { %886 = vadd.xlane.f32.xlu0 %v885_v45 }
 0x387   :  { %v874_v46 = vpop.xlane.xlu1 %873 }
 0x388   :  { %v875_v47 = vsub.f32 %v859_v39, %v874_v46 }
 0x389   :  { %v887_v55 = vpop.xlane.xlu0 %886 }
 0x38a   :  { %v876_v48 = vmul.f32 1.442695, %v875_v47 }
 0x38c   :  { %1054 = vpow2.f32 %v876_v48 }
 0x392   :  { %v1055_v49 = vpop.eup %1054 }
 0x393   :  { %v878_v52 = vsel %vm861_vm11, %v1055_v49, 0.0 }
 0x394   :  { %879 = vadd.xlane.f32.xlu2 %v878_v52 }
 0x407   :  { %v880_v50 = vpop.xlane.xlu2 %879 }
 0x408   :  { %1056 = vlog2.f32 %v880_v50 }
 0x40e   :  { %v1057_v51 = vpop.eup %1056 }
 0x40f   :  { %v882_v53 = vmul.f32 0.6931472, %v1057_v51 }
 0x411   :  { %v883_v54 = vadd.f32 %v882_v53, %v874_v46 }
 0x413   :  { %v888_v56 = vsub.f32 %v883_v54, %v887_v55 }
 0x415   :  { %889 = vst.msk [vmem:[%s1514_s12] sm:$0xff] %vm237_vm6, %v888_v56 }
 0x416   :  { %898 = vsyncmov [#allocation3] }
 0x419   :  { %s899_s0 = vpop.sfrf %898 }
 0x41a   :  { %p969_p2 = scmp.ne.s32.totalorder %s899_s0, 0 }
 0x41c   :  { %903 = shalt.err (%p969_p2)  }

</bundles_post_ra>
